<compile_context>
chip_gen: v5e
topology: v5e:2x2
jax: 0.10.0
libtpu: 0.0.40
codegen_flags: <defaults>
</compile_context>

<pallas_src>
import functools

import jax
import jax.numpy as jnp
from jax import lax
from jax.experimental import pallas as pl
from jax.experimental.pallas import tpu as pltpu


def _cls_decoder_kernel(atten_ref, shortcut_ref, w_ref, b_ref, out_ref, *,
                        compute_dtype):
    # atten_ref:    (N, T, HW)    native dtype; cast in VMEM below
    # shortcut_ref: (N, C, HW)    native NCHW-flattened layout (no transpose)
    # w_ref:        (nclass, C)   torch nn.Linear weight, used as-is
    # b_ref:        (1, nclass)
    # out_ref:      (N, T, nclass)
    a = atten_ref[...]
    s = shortcut_ref[...]
    w = w_ref[...]
    if compute_dtype is not None:
        # In-kernel cast (hides under the input DMA) instead of wrapper-side
        # .astype passes that would re-read/write the arrays in HBM.
        a = a.astype(compute_dtype)
        s = s.astype(compute_dtype)
        w = w.astype(compute_dtype)

    # feat[n, t, c] = sum_h a[n, t, h] * s[n, c, h]   (contract HW, batch N)
    feat = lax.dot_general(
        a, s,
        dimension_numbers=(((2,), (2,)), ((0,), (0,))),
        preferred_element_type=jnp.float32)                  # (N, T, C), f32 acc

    n = feat.shape[0]
    if compute_dtype is not None:
        feat = feat.astype(compute_dtype)

    # logits[n, t, k] = sum_c feat[n, t, c] * w[k, c]
    # Same batched-MXU pattern as above; keeps the (N, T, .) shape end-to-end
    # so no reshape relayout is materialized in VMEM.
    w_b = jnp.broadcast_to(w[None, :, :], (n,) + w.shape)    # (N, nclass, C), tiny
    logits = lax.dot_general(
        feat, w_b,
        dimension_numbers=(((2,), (2,)), ((0,), (0,))),
        preferred_element_type=jnp.float32)                  # (N, T, nclass), f32
    logits = logits + b_ref[...]                             # bias add stays f32
    out_ref[...] = logits.astype(out_ref.dtype)


def cls_decoder(atten, shortcut, w_fc, b_fc, *, T, compute_dtype=jnp.bfloat16):
    """Forward of ClsDecoder.

    atten:    (N, T, H, W)
    shortcut: (N, C, H, W)
    w_fc:     (nclass, C)   torch nn.Linear weight layout (no prep required)
    b_fc:     (nclass,)
    compute_dtype: MXU operand dtype (default bf16; accumulation stays f32).
                   Pass None for full-f32 operands.
    """
    N, C, H, W = shortcut.shape
    HW = H * W
    nclass = w_fc.shape[0]

    # Pure-metadata reshapes only -- no transpose / pad / cast / slice in the
    # call path; at ~100 KB of traffic this kernel is dispatch-bound.
    atten_r = atten.reshape(N, T, HW)
    shortcut_r = shortcut.reshape(N, C, HW)
    b_r = b_fc.reshape(1, nclass)

    flops = 2 * N * T * HW * C + 2 * N * T * C * nclass
    bytes_accessed = (atten_r.size * atten_r.dtype.itemsize
                      + shortcut_r.size * shortcut_r.dtype.itemsize
                      + w_fc.size * w_fc.dtype.itemsize
                      + b_r.size * b_r.dtype.itemsize
                      + N * T * nclass * jnp.dtype(atten.dtype).itemsize)

    vmem = pl.BlockSpec(memory_space=pltpu.MemorySpace.VMEM)
    kernel = functools.partial(_cls_decoder_kernel, compute_dtype=compute_dtype)
    out = pl.pallas_call(
        kernel,
        out_shape=jax.ShapeDtypeStruct((N, T, nclass), atten.dtype),
        in_specs=[vmem, vmem, vmem, vmem],   # whole batch resident in VMEM
        out_specs=vmem,                      # single grid step: no pipelining
        cost_estimate=pl.CostEstimate(
            flops=flops, transcendentals=0, bytes_accessed=bytes_accessed),
    )(atten_r, shortcut_r, w_fc, b_r)
    return out
    # TODO(synk): if shapes grow, budget residency with
    # pltpu.get_tpu_info().vmem_capacity_bytes (v7x: 64 MiB physical / 32 MiB
    # scoped default; v5e: 16 MiB scoped default) and reintroduce a grid over
    # N with dimension_semantics=("parallel",) (2 TCs on v7x) plus an
    # "arbitrary" HW-reduction axis with a VMEM feat accumulator.


def _reference(atten, shortcut, w_fc, b_fc, *, T):
    N, C, H, W = shortcut.shape
    a = atten.reshape(N, T, -1)
    s = shortcut.reshape(N, C, -1).transpose(0, 2, 1)
    feat = jnp.matmul(a, s)                              # (N, T, C)
    return jnp.matmul(feat, w_fc.T) + b_fc               # (N, T, nclass)


if __name__ == "__main__":
    # Small shapes consistent with the module's forward.
    N, C, H, W = 2, 32, 16, 16
    T = 8
    nclass = 10

    key = jax.random.PRNGKey(0)
    k1, k2, k3, k4 = jax.random.split(key, 4)
    atten = jax.random.normal(k1, (N, T, H, W), dtype=jnp.float32)
    shortcut = jax.random.normal(k2, (N, C, H, W), dtype=jnp.float32)
    # Deterministic synthetic fc params (LazyLinear would be (nclass, C) + (nclass,))
    bound = 1.0 / jnp.sqrt(C)
    w_fc = jax.random.uniform(k3, (nclass, C), jnp.float32, -bound, bound)
    b_fc = jax.random.uniform(k4, (nclass,), jnp.float32, -bound, bound)

    ref = _reference(atten, shortcut, w_fc, b_fc, T=T)

    # Default path: bf16 MXU operands, f32 accumulation -> loose tolerance.
    out_bf16 = jax.block_until_ready(cls_decoder(atten, shortcut, w_fc, b_fc, T=T))
    assert out_bf16.shape == (N, T, nclass), out_bf16.shape
    rel_err = jnp.max(jnp.abs(out_bf16 - ref)) / jnp.max(jnp.abs(ref))
    assert rel_err < 2e-2, f"bf16 path mismatch vs reference: rel_err={rel_err}"

    # Full-f32 path matches the module semantics tightly.
    out_f32 = jax.block_until_ready(
        cls_decoder(atten, shortcut, w_fc, b_fc, T=T, compute_dtype=None))
    assert out_f32.shape == (N, T, nclass), out_f32.shape
    assert jnp.allclose(out_f32, ref, atol=1e-4, rtol=1e-4), "f32 path mismatch"

    print("KERNEL_OK")
</pallas_src>

<mosaic_0001>
module attributes {stable_mosaic.version = 11 : i64} {
  func.func @_cls_decoder_kernel(%arg0: memref<2x8x256xf32, #tpu.memory_space<vmem>>, %arg1: memref<2x32x256xf32, #tpu.memory_space<vmem>>, %arg2: memref<10x32xf32, #tpu.memory_space<vmem>>, %arg3: memref<1x10xf32, #tpu.memory_space<vmem>>, %arg4: memref<2x8x10xf32, #tpu.memory_space<vmem>>) attributes {dimension_semantics = [], scalar_prefetch = 0 : i64, scratch_operands = 0 : i64, tpu.core_type = #tpu.core_type<tc>} {
    %c0 = arith.constant 0 : index
    %c0_0 = arith.constant 0 : index
    %c0_1 = arith.constant 0 : index
    %0 = vector.load %arg0[%c0, %c0_0, %c0_1] : memref<2x8x256xf32, #tpu.memory_space<vmem>>, vector<2x8x256xf32>
    %c0_2 = arith.constant 0 : index
    %c0_3 = arith.constant 0 : index
    %c0_4 = arith.constant 0 : index
    %1 = vector.load %arg1[%c0_2, %c0_3, %c0_4] : memref<2x32x256xf32, #tpu.memory_space<vmem>>, vector<2x32x256xf32>
    %c0_5 = arith.constant 0 : index
    %c0_6 = arith.constant 0 : index
    %2 = vector.load %arg2[%c0_5, %c0_6] : memref<10x32xf32, #tpu.memory_space<vmem>>, vector<10x32xf32>
    %3 = arith.truncf %0 : vector<2x8x256xf32> to vector<2x8x256xbf16>
    %4 = arith.truncf %1 : vector<2x32x256xf32> to vector<2x32x256xbf16>
    %5 = arith.truncf %2 : vector<10x32xf32> to vector<10x32xbf16>
    %cst = arith.constant dense<0.000000e+00> : vector<2x8x32xf32>
    %6 = tpu.matmul %3, %4, %cst {dimension_numbers = #tpu.dot_dimension_numbers<[2], [2], [1], [1], [0, 0, 0, 1, 1, 1], [0], [0]>} : vector<2x8x256xbf16>, vector<2x32x256xbf16>, vector<2x8x32xf32> -> vector<2x8x32xf32>
    %7 = arith.truncf %6 : vector<2x8x32xf32> to vector<2x8x32xbf16>
    %8 = vector.shape_cast %5 : vector<10x32xbf16> to vector<1x10x32xbf16>
    %9 = vector.shape_cast %8 : vector<1x10x32xbf16> to vector<1x10x32xbf16>
    %10 = vector.broadcast %9 : vector<1x10x32xbf16> to vector<2x10x32xbf16>
    %cst_7 = arith.constant dense<0.000000e+00> : vector<2x8x10xf32>
    %11 = tpu.matmul %7, %10, %cst_7 {dimension_numbers = #tpu.dot_dimension_numbers<[2], [2], [1], [1], [0, 0, 0, 1, 1, 1], [0], [0]>} : vector<2x8x32xbf16>, vector<2x10x32xbf16>, vector<2x8x10xf32> -> vector<2x8x10xf32>
    %c0_8 = arith.constant 0 : index
    %c0_9 = arith.constant 0 : index
    %12 = vector.load %arg3[%c0_8, %c0_9] : memref<1x10xf32, #tpu.memory_space<vmem>>, vector<1x10xf32>
    %13 = vector.shape_cast %12 : vector<1x10xf32> to vector<1x1x10xf32>
    %14 = vector.broadcast %13 : vector<1x1x10xf32> to vector<2x8x10xf32>
    %15 = arith.addf %11, %14 : vector<2x8x10xf32>
    %c0_10 = arith.constant 0 : index
    %c0_11 = arith.constant 0 : index
    %c0_12 = arith.constant 0 : index
    %16 = vector.load %arg4[%c0_10, %c0_11, %c0_12] : memref<2x8x10xf32, #tpu.memory_space<vmem>>, vector<2x8x10xf32>
    tpu.vector_store %arg4[%c0_10, %c0_11, %c0_12], %15 {strides = array<i32>} : memref<2x8x10xf32, #tpu.memory_space<vmem>>, vector<2x8x10xf32>,
    return
  }
}

</mosaic_0001>

<bundles_post_ra>
// kernel: tpu_custom_call.1
= control target key start
LH: loop header
LB: loop body
LE: loop exit
PB: predicated region body
PF: predicated region fallthrough
CT: control target
= control target key end

     0   :  { %9 = vsyncpa [#allocation3], 0  ;;  %s446_s0 = inlined_call_operand.hbm [shape: f32[2,8,256], index: 0, kind: input, shape index: {}]   ;;  %s447_s1 = inlined_call_operand.hbm [shape: f32[2,32,256], index: 1, kind: input, shape index: {}]   ;;  %s448_s2 = inlined_call_operand.hbm [shape: f32[10,32], index: 2, kind: input, shape index: {}]   ;;  %s449_s3 = inlined_call_operand.vmem [shape: f32[1,10], index: 3, kind: input, shape index: {}]   ;;  %s450_s4 = inlined_call_operand.hbm [shape: f32[2,8,10], index: 4, kind: output, shape index: {}]  }
   0x1   :  { %10 = vsyncpa [#allocation6], 0 }
   0x2   :  { %11 = vsyncpa [#allocation4], 0  ;;  %s29_s17 = sshll.u32 %s447_s1, 4  ;;  %s389_s18 = smov [#allocation5]   ;;  %s30_s17 = int_to_ptr.hbm [resolvable:$true] %s29_s17 }
   0x3   :  { %s31_s19 = sshll.u32 %s389_s18, 4  ;;  %s16_s22 = sshll.u32 %s446_s0, 4  ;;  %s32_s19 = int_to_ptr.vmem [resolvable:$true] %s31_s19  ;;  %s17_s22 = int_to_ptr.hbm [resolvable:$true] %s16_s22 }
   0x4   :  { %s390_s23 = smov 256   ;;  %s391_s24 = smov 16  }
   0x5   :  { %37 = dma.hbm_to_vmem [thread:$0]  %s30_s17, 2048, %s32_s19, [#allocation6], %s390_s23, %s390_s23, %s391_s24  }
   0x6   :  { %s392_s25 = smov [#allocation2]   ;;  %s42_s29 = sshll.u32 %s448_s2, 4  ;;  %s43_s29 = int_to_ptr.hbm [resolvable:$true] %s42_s29 }
   0x7   :  { %s18_s26 = sshll.u32 %s392_s25, 4  ;;  %s393_s1 = smov [#allocation7]   ;;  %s19_s26 = int_to_ptr.vmem [resolvable:$true] %s18_s26 }
   0x8   :  { %24 = dma.hbm_to_vmem [thread:$0]  %s17_s22, 512, %s19_s26, [#allocation3], %s390_s23, %s390_s23, %s391_s24  }
   0x9   :  { %s44_s30 = sshll.u32 %s393_s1, 4  ;;  %s394_s5 = smov 128   ;;  %s45_s30 = int_to_ptr.vmem [resolvable:$true] %s44_s30 }
   0xa   :  { %s395_s6 = smov 8  }
   0xb   :  { %50 = dma.hbm_to_vmem [thread:$0]  %s43_s29, 256, %s45_s30, [#allocation6], %s394_s5, %s394_s5, %s395_s6  }
   0xc   :  { %383 = dma.done.wait [#allocation3], 512  }
   0xd   :  { %384 = vsyncadd [#allocation3], 4294966784 }
   0xe   :  { %385 = dma.done.wait [#allocation6], 2304  }
   0xf   :  { %386 = vsyncadd [#allocation6], 4294964992  ;;  %v74_v0 = vld [vmem:[#allocation5 + $0x20] sm:$0xff]  ;;  %v75_v1 = vld [vmem:[#allocation5 + $0x28] sm:$0xff]  ;;  %vm217_vm0 = vcmask 261120   ;;  %vm253_vm1 = vcmask 80896  }
  0x10   :  { %v76_v2 = vld [vmem:[#allocation5 + $0x30] sm:$0xff]  ;;  %v77_v3 = vld [vmem:[#allocation5 + $0x38] sm:$0xff]  ;;  %v92_v4 = vpack.c.bf16 %v75_v1, %v74_v0  ;;  %v82_v5 = vld [vmem:[#allocation5 + $0x60] sm:$0xff]  ;;  %s396_s7 = smov [#allocation8]   ;;  %s262_s11 = sshll.u32 %s450_s4, 4  ;;  %s263_s11 = int_to_ptr.hbm [resolvable:$true] %s262_s11 }
  0x11   :  { %v83_v6 = vld [vmem:[#allocation5 + $0x68] sm:$0xff]  ;;  %v93_v7 = vpack.c.bf16 %v77_v3, %v76_v2  ;;  %v84_v8 = vld [vmem:[#allocation5 + $0x70] sm:$0xff]  ;;  %v85_v9 = vld [vmem:[#allocation5 + $0x78] sm:$0xff]  ;;  %s260_s8 = sshll.u32 %s396_s7, 4  ;;  %s261_s8 = int_to_ptr.vmem [resolvable:$true] %s260_s8 }
  0x12   :  { %v96_v10 = vpack.c.bf16 %v83_v6, %v82_v5  ;;  %v70_v11 = vld [vmem:[#allocation5] sm:$0xff]  ;;  %v115_v12 = vunpack.c.l.b16 %v92_v4  ;;  %v116_v13 = vunpack.c.h.b16 %v92_v4  ;;  %v97_v14 = vpack.c.bf16 %v85_v9, %v84_v8  ;;  %v71_v15 = vld [vmem:[#allocation5 + $0x8] sm:$0xff]  ;;  %v72_v16 = vld [vmem:[#allocation5 + $0x10] sm:$0xff] }
  0x13   :  { %v73_v17 = vld [vmem:[#allocation5 + $0x18] sm:$0xff]  ;;  %v117_v18 = vunpack.c.l.b16 %v93_v7  ;;  %v118_v19 = vunpack.c.h.b16 %v93_v7  ;;  %v78_v22 = vld [vmem:[#allocation5 + $0x40] sm:$0xff]  ;;  %v79_v23 = vld [vmem:[#allocation5 + $0x48] sm:$0xff]  ;;  %v90_v27 = vpack.c.bf16 %v71_v15, %v70_v11 }
  0x14   :  { %v168_v20 = vunpack.c.l.b16 %v96_v10  ;;  %v169_v21 = vunpack.c.h.b16 %v96_v10  ;;  %v80_v24 = vld [vmem:[#allocation5 + $0x50] sm:$0xff]  ;;  %v170_v25 = vunpack.c.l.b16 %v97_v14  ;;  %v171_v26 = vunpack.c.h.b16 %v97_v14  ;;  %v81_v29 = vld [vmem:[#allocation5 + $0x58] sm:$0xff]  ;;  %v86_v36 = vld [vmem:[#allocation7] sm:$0xff] }
  0x15   :  { %v91_v28 = vpack.c.bf16 %v73_v17, %v72_v16  ;;  %v121_v30 = vpack.c.b16 %v117_v18, %v115_v12  ;;  %v122_v31 = vpack.c.b16 %v118_v19, %v116_v13  ;;  %v94_v32 = vpack.c.bf16 %v79_v23, %v78_v22  ;;  %v66_v41 = vld [vmem:[#allocation2] sm:$0xff]  ;;  %v67_v42 = vld [vmem:[#allocation2 + $0x8] sm:$0xff]  ;;  %v68_v48 = vld [vmem:[#allocation2 + $0x10] sm:$0xff] }
  0x16   :  { %v95_v33 = vpack.c.bf16 %v81_v29, %v80_v24  ;;  %v174_v34 = vpack.c.b16 %v170_v25, %v168_v20  ;;  %v175_v35 = vpack.c.b16 %v171_v26, %v169_v21  ;;  %v111_v37 = vunpack.c.l.b16 %v90_v27  ;;  %v87_v43 = vld [vmem:[#allocation7 + $0x8] sm:$0x3]  ;;  %v69_v49 = vld [vmem:[#allocation2 + $0x18] sm:$0xff]  ;;  %v286_v18 = vld [vmem:[%s449_s3] ss:$0 sm:$0xff] }
  0x17   :  { %133 = vmatpush.bf16.xpose.msra.mxu0 %v121_v30  ;;  %146 = vmatpush.bf16.xpose.msra.mxu1 %v122_v31  ;;  %v113_v38 = vunpack.c.l.b16 %v91_v28  ;;  %v112_v39 = vunpack.c.h.b16 %v90_v27  ;;  %v114_v40 = vunpack.c.h.b16 %v91_v28  ;;  %v164_v44 = vunpack.c.l.b16 %v94_v32 }
  0x18   :  { %186 = vmatpush.bf16.xpose.msra.mxu2 %v174_v34  ;;  %199 = vmatpush.bf16.xpose.msra.mxu3 %v175_v35  ;;  %v166_v45 = vunpack.c.l.b16 %v95_v33  ;;  %v165_v46 = vunpack.c.h.b16 %v94_v32  ;;  %v167_v47 = vunpack.c.h.b16 %v95_v33  ;;  %v98_v50 = vpack.c.bf16 %v86_v36, %v86_v36 }
  0x19   :  { %v88_v51 = vpack.c.bf16 %v67_v42, %v66_v41  ;;  %v99_v52 = vpack.c.bf16 %v87_v43, %v87_v43  ;;  %v119_v53 = vpack.c.b16 %v113_v38, %v111_v37  ;;  %v120_v54 = vpack.c.b16 %v114_v40, %v112_v39 }
  0x1a   :  { %v89_v55 = vpack.c.bf16 %v69_v49, %v68_v48  ;;  %v214_v56 = vunpack.c.l.b16 %v98_v50  ;;  %v172_v57 = vpack.c.b16 %v166_v45, %v164_v44  ;;  %v173_v58 = vpack.c.b16 %v167_v47, %v165_v46 }
  0x1b   :  { %v215_v59 = vunpack.c.l.b16 %v99_v52  ;;  %v101_v60 = vunpack.c.l.b16 %v88_v51  ;;  %v102_v61 = vunpack.c.h.b16 %v88_v51 }
  0x1c   :  { %v154_v63 = vunpack.c.l.b16 %v89_v55  ;;  %v155_v0 = vunpack.c.h.b16 %v89_v55 }
  0x1d   :  { %v216_v62 = vpack.c.b16 %v215_v59, %v214_v56  ;;  %v103_v2 = vpack.c.b16 %v101_v60, %v101_v60  ;;  %v104_v3 = vpack.c.b16 %v102_v61, %v102_v61 }
  0x1e   :  { %v156_v4 = vpack.c.b16 %v154_v63, %v154_v63  ;;  %v157_v5 = vpack.c.b16 %v155_v0, %v155_v0 }
  0x1f   :  { %134 = vmatpush.bf16.xpose.msra.mxu0 %v119_v53  ;;  %147 = vmatpush.bf16.xpose.msra.mxu1 %v120_v54  ;;  %v222_v1 = vsel %vm217_vm0, %v216_v62, 0 }
  0x20   :  { %187 = vmatpush.bf16.xpose.msra.mxu2 %v172_v57  ;;  %200 = vmatpush.bf16.xpose.msra.mxu3 %v173_v58 }
  0x26   :  { %135 = vmatmul.bf16.vlgmr.msra.gmra.mxu0 %v103_v2  ;;  %148 = vmatmul.bf16.vlgmr.msra.gmra.mxu1 %v104_v3 }
  0x27   :  { %231 = vmatpush.bf16.xpose.msrb.mxu0 %v222_v1  ;;  %247 = vmatpush.bf16.xpose.msrb.mxu1 %v222_v1 }
  0x28   :  { %188 = vmatmul.bf16.vlgmr.msra.gmra.mxu2 %v156_v4  ;;  %201 = vmatmul.bf16.vlgmr.msra.gmra.mxu3 %v157_v5 }
  0xa3   :  { %v136_v6 = vpop.f32.mrf.mxu0  ;;  %v149_v7 = vpop.f32.mrf.mxu1 }
  0xa4   :  { %v150_v8 = vadd.f32 %v149_v7, %v136_v6 }
  0xa6   :  { %v206_v9 = vpack.c.bf16 %v150_v8, %v150_v8 }
  0xa8   :  { %276 = vmatmul.msk.bf16.vlgmr.msrb.gmra.mxu0 %vm217_vm0, %v206_v9 }
  0xab   :  { %v189_v10 = vpop.f32.mrf.mxu2  ;;  %v202_v11 = vpop.f32.mrf.mxu3 }
  0xac   :  { %v203_v12 = vadd.f32 %v202_v11, %v189_v10  ;;  %v138_v13 = vpop.f32.mrf.mxu0  ;;  %v151_v14 = vpop.f32.mrf.mxu1 }
  0xae   :  { %v207_v15 = vpack.c.bf16 %v203_v12, %v203_v12 }
  0xb0   :  { %277 = vmatmul.msk.bf16.vlgmr.msrb.gmra.mxu1 %vm217_vm0, %v207_v15 }
  0xb3   :  { %v191_v16 = vpop.f32.mrf.mxu2  ;;  %v204_v17 = vpop.f32.mrf.mxu3 }
 0x125   :  { %v233_v19 = vpop.f32.mrf.mxu0 }
 0x126   :  { %v234_v20 = vadd.f32 %v286_v18, %v233_v19 }
 0x128   :  { %254 = vst.msk [vmem:[#allocation8] sm:$0xff] %vm253_vm1, %v234_v20 }
 0x12d   :  { %v249_v21 = vpop.f32.mrf.mxu1  ;;  %v235_v23 = vpop.f32.mrf.mxu0 }
 0x12e   :  { %v250_v22 = vadd.f32 %v286_v18, %v249_v21 }
 0x130   :  { %255 = vst.msk [vmem:[#allocation8 + $0x8] sm:$0xff] %vm253_vm1, %v250_v22 }
 0x131   :  { %268 = dma.vmem_to_hbm [thread:$0]  %s261_s8, 256, %s263_s11, [#allocation4], %s394_s5, %s394_s5, %s395_s6  }
 0x135   :  { %v251_v24 = vpop.f32.mrf.mxu1 }
 0x136   :  { %387 = dma.done.wait [#allocation4], 256  }
 0x137   :  { %388 = vsyncadd [#allocation4], 4294967040 }
 0x138   :  { %273 = vsyncpa [#allocation3], 1 }
 0x139   :  { %274 = vsyncpa [#allocation6], 1 }
 0x13a   :  { %275 = vsyncpa [#allocation4], 1 }

</bundles_post_ra>
